<compile_context>
chip_gen: v5e
topology: v5e:2x2
jax: 0.10.0
libtpu: 0.0.40
codegen_flags: <defaults>
</compile_context>

<pallas_src>
import functools

import jax
import jax.numpy as jnp
from jax import lax
from jax.experimental import pallas as pl
from jax.experimental.pallas import tpu as pltpu


# --------------------------------------------------------------------------
# Pallas kernel: one TILE_B-row slab of the NeuMF forward.
# --------------------------------------------------------------------------
def neumf_kernel(
    u_ref,        # (TILE_B, n_emb)  user embedding slab   (compute dtype)
    i_ref,        # (TILE_B, n_emb)  item embedding slab   (compute dtype)
    w1u_ref,      # (n_emb, L1)      MLP layer 1, rows matching user part
    w1i_ref,      # (n_emb, L1)      MLP layer 1, rows matching item part
    b1_ref,       # (1, L1)          fp32
    w2_ref,       # (L1, L2)
    b2_ref,       # (1, L2)          fp32
    w3_ref,       # (L2, L3)
    b3_ref,       # (1, L3)          fp32
    wo_mf_ref,    # (1, n_emb)       output layer, MF part (as a row)
    wo_mlp_ref,   # (1, L3)          output layer, MLP part (as a row)
    bo_ref,       # (1, 1)           fp32
    o_ref,        # (1, TILE_B)      fp32 predictions (lane-dense row)
):
    u = u_ref[...]
    it = i_ref[...]
    cdt = u.dtype                      # matmul-operand dtype (f32 or bf16)

    # --- GMF branch: element-wise product (VPU) ---
    mf = u * it                        # (TILE_B, n_emb)

    # --- MLP branch ---
    # layer 1: cat([u, it]) @ W1 + b1 == u @ W1_top + it @ W1_bot + b1
    h = (
        jnp.dot(u, w1u_ref[...], preferred_element_type=jnp.float32)
        + jnp.dot(it, w1i_ref[...], preferred_element_type=jnp.float32)
        + b1_ref[...]
    )
    h = jnp.maximum(h, 0.0)            # ReLU in fp32 (dropout == identity)

    # layer 2
    h = jnp.dot(h.astype(cdt), w2_ref[...],
                preferred_element_type=jnp.float32) + b2_ref[...]
    h = jnp.maximum(h, 0.0)

    # layer 3
    h = jnp.dot(h.astype(cdt), w3_ref[...],
                preferred_element_type=jnp.float32) + b3_ref[...]
    h = jnp.maximum(h, 0.0)

    # --- output layer on cat([mf, h]) ---
    # Contract the feature axis of both operands (wo_row · xᵀ) so the result is
    # a lane-dense (1, TILE_B) row — no N=1 MXU matmul, no masked stores.
    dn = (((1,), (1,)), ((), ()))      # contract lhs dim 1 with rhs dim 1
    logits = (
        lax.dot_general(wo_mf_ref[...], mf, dn,
                        preferred_element_type=jnp.float32)
        + lax.dot_general(wo_mlp_ref[...], h.astype(cdt), dn,
                          preferred_element_type=jnp.float32)
        + bo_ref[...]
    )                                  # (1, TILE_B) fp32
    o_ref[...] = jax.nn.sigmoid(logits)


def _resident_spec(shape):
    # Whole-array block, same block index at every grid step -> stays in VMEM.
    return pl.BlockSpec(shape, lambda b: tuple(0 for _ in shape))


# --------------------------------------------------------------------------
# Wrapper: batch-tiled pallas_call.
# --------------------------------------------------------------------------
@functools.partial(jax.jit, static_argnames=("tile_b", "compute_dtype"))
def neumf_forward(user_embs, item_embs, params, *, tile_b=1024,
                  compute_dtype=jnp.float32):
    """NeuMF forward pass.

    user_embs, item_embs : (B, n_emb) float32
    params               : dict of weights (see init_params)
    tile_b               : batch rows per grid step (multiple of 128 advised;
                           1024-2048 for production batches)
    compute_dtype        : dtype of matmul operands (f32, or bf16 on v6e/v7x
                           for ~2x HBM bandwidth; accumulation stays fp32)
    """
    B, n_emb = user_embs.shape
    tile_b = min(tile_b, max(128, ((B + 127) // 128) * 128))
    b_pad = ((B + tile_b - 1) // tile_b) * tile_b
    if b_pad != B:
        pad = b_pad - B
        user_embs = jnp.pad(user_embs, ((0, pad), (0, 0)))
        item_embs = jnp.pad(item_embs, ((0, pad), (0, 0)))
    num_tiles = b_pad // tile_b

    cdt = compute_dtype
    u = user_embs.astype(cdt)
    it = item_embs.astype(cdt)
    w1u = params["w1_user"].astype(cdt)
    w1i = params["w1_item"].astype(cdt)
    w2 = params["w2"].astype(cdt)
    w3 = params["w3"].astype(cdt)
    wo_mf = params["wo_mf"].astype(cdt)      # (1, n_emb)
    wo_mlp = params["wo_mlp"].astype(cdt)    # (1, L3)
    b1 = params["b1"].astype(jnp.float32)
    b2 = params["b2"].astype(jnp.float32)
    b3 = params["b3"].astype(jnp.float32)
    bo = params["bo"].astype(jnp.float32)

    args = (u, it, w1u, w1i, b1, w2, b2, w3, b3, wo_mf, wo_mlp, bo)

    in_specs = [
        pl.BlockSpec((tile_b, n_emb), lambda b: (b, 0)),   # user slab
        pl.BlockSpec((tile_b, n_emb), lambda b: (b, 0)),   # item slab
    ] + [_resident_spec(a.shape) for a in args[2:]]

    grid_spec = pltpu.PrefetchScalarGridSpec(
        num_scalar_prefetch=0,
        grid=(num_tiles,),
        in_specs=in_specs,
        out_specs=pl.BlockSpec((1, tile_b), lambda b: (0, b)),  # lane-dense
    )

    out = pl.pallas_call(
        neumf_kernel,
        out_shape=jax.ShapeDtypeStruct((1, b_pad), jnp.float32),
        grid_spec=grid_spec,
        compiler_params=pltpu.CompilerParams(
            dimension_semantics=("parallel",)),   # megacore on v7x
    )(*args)

    preds = out.reshape(b_pad, 1)
    return preds[:B]


# --------------------------------------------------------------------------
# Parameter construction (mirrors NeuMF.__init__ shapes, PyTorch init)
# --------------------------------------------------------------------------
def init_params(key, n_emb, layers):
    # layers[0] must equal 2 * n_emb (concat of user+item embeddings)
    assert layers[0] == 2 * n_emb
    ks = jax.random.split(key, 4)

    def lin(k, fan_in, fan_out):
        # PyTorch nn.Linear default: U(-1/sqrt(fan_in), 1/sqrt(fan_in))
        bound = 1.0 / jnp.sqrt(jnp.float32(fan_in))
        kw, kb = jax.random.split(k)
        w = jax.random.uniform(kw, (fan_in, fan_out), jnp.float32, -bound, bound)
        b = jax.random.uniform(kb, (1, fan_out), jnp.float32, -bound, bound)
        return w, b

    w1, b1 = lin(ks[0], layers[0], layers[1])
    w2, b2 = lin(ks[1], layers[1], layers[2])
    w3, b3 = lin(ks[2], layers[2], layers[3])
    wo, bo = lin(ks[3], n_emb + layers[-1], 1)

    return {
        "w1_user": w1[:n_emb, :],
        "w1_item": w1[n_emb:, :],
        "b1": b1,
        "w2": w2,
        "b2": b2,
        "w3": w3,
        "b3": b3,
        "wo_mf": wo[:n_emb, :].T,     # stored as (1, n_emb) row
        "wo_mlp": wo[n_emb:, :].T,    # stored as (1, L3) row
        "bo": bo,
    }


# --------------------------------------------------------------------------
# Plain-JAX reference (sanity check)
# --------------------------------------------------------------------------
def neumf_reference(user_embs, item_embs, params):
    mf = user_embs * item_embs
    mlp = jnp.concatenate([user_embs, item_embs], axis=1)
    w1 = jnp.concatenate([params["w1_user"], params["w1_item"]], axis=0)
    h = jax.nn.relu(mlp @ w1 + params["b1"])
    h = jax.nn.relu(h @ params["w2"] + params["b2"])
    h = jax.nn.relu(h @ params["w3"] + params["b3"])
    z = jnp.concatenate([mf, h], axis=1)
    wo = jnp.concatenate([params["wo_mf"].T, params["wo_mlp"].T], axis=0)
    return jax.nn.sigmoid(z @ wo + params["bo"])


if __name__ == "__main__":
    key = jax.random.PRNGKey(0)

    # Small, module-consistent shapes (multi-tile batch to exercise the grid).
    n_emb = 16
    layers = [2 * n_emb, 64, 32, 16]          # layers[0] == 2 * n_emb
    n_users, n_items, batch = 64, 96, 512
    tile_b = 128                               # multiple of 128 (v5e MXU rows)

    k_params, k_uemb, k_iemb, k_uid, k_iid = jax.random.split(key, 5)
    params = init_params(k_params, n_emb, layers)

    # Pretrained embedding tables (NeuMFWrapper's from_pretrained path).
    user_table = jax.random.normal(k_uemb, (n_users, n_emb), jnp.float32)
    item_table = jax.random.normal(k_iemb, (n_items, n_emb), jnp.float32)
    users = jax.random.randint(k_uid, (batch,), 0, n_users)
    items = jax.random.randint(k_iid, (batch,), 0, n_items)

    # TODO(synk): fuse this embedding gather into the kernel (scalar-prefetched
    # indices + per-row DMA gather) to avoid materializing (B, n_emb) in HBM twice.
    user_embs = user_table[users]             # (B, n_emb)
    item_embs = item_table[items]             # (B, n_emb)

    ref = neumf_reference(user_embs, item_embs, params)

    # fp32 path
    preds = neumf_forward(user_embs, item_embs, params, tile_b=tile_b)
    preds = jax.block_until_ready(preds)
    assert preds.shape == (batch, 1)
    assert jnp.allclose(preds, ref, atol=1e-4, rtol=1e-4)

    # bf16 matmul operands (fp32 accumulation) — bandwidth-optimized path.
    preds_bf16 = neumf_forward(user_embs, item_embs, params, tile_b=tile_b,
                               compute_dtype=jnp.bfloat16)
    preds_bf16 = jax.block_until_ready(preds_bf16)
    assert preds_bf16.shape == (batch, 1)
    assert jnp.allclose(preds_bf16, ref, atol=3e-2)

    print("KERNEL_OK")
</pallas_src>

<mosaic_0001>
module attributes {stable_mosaic.version = 11 : i64} {
  func.func @neumf_kernel(%arg0: i32, %arg1: memref<128x16xf32, #tpu.memory_space<vmem>>, %arg2: memref<128x16xf32, #tpu.memory_space<vmem>>, %arg3: memref<16x64xf32, #tpu.memory_space<vmem>>, %arg4: memref<16x64xf32, #tpu.memory_space<vmem>>, %arg5: memref<1x64xf32, #tpu.memory_space<vmem>>, %arg6: memref<64x32xf32, #tpu.memory_space<vmem>>, %arg7: memref<1x32xf32, #tpu.memory_space<vmem>>, %arg8: memref<32x16xf32, #tpu.memory_space<vmem>>, %arg9: memref<1x16xf32, #tpu.memory_space<vmem>>, %arg10: memref<1x16xf32, #tpu.memory_space<vmem>>, %arg11: memref<1x16xf32, #tpu.memory_space<vmem>>, %arg12: memref<1x1xf32, #tpu.memory_space<vmem>>, %arg13: memref<1x128xf32, #tpu.memory_space<vmem>>) attributes {dimension_semantics = [#tpu.dimension_semantics<parallel>], iteration_bounds = array<i64: 4>, scalar_prefetch = 0 : i64, scratch_operands = 0 : i64, tpu.core_type = #tpu.core_type<tc>, window_params = [{transform_indices = @transform_0, window_bounds = array<i64: 128, 16>}, {transform_indices = @transform_1, window_bounds = array<i64: 128, 16>}, {pipeline_mode = #tpu.pipeline_mode<synchronous>, transform_indices = @transform_2, window_bounds = array<i64: 16, 64>}, {pipeline_mode = #tpu.pipeline_mode<synchronous>, transform_indices = @transform_3, window_bounds = array<i64: 16, 64>}, {pipeline_mode = #tpu.pipeline_mode<synchronous>, transform_indices = @transform_4, window_bounds = array<i64: 1, 64>}, {pipeline_mode = #tpu.pipeline_mode<synchronous>, transform_indices = @transform_5, window_bounds = array<i64: 64, 32>}, {pipeline_mode = #tpu.pipeline_mode<synchronous>, transform_indices = @transform_6, window_bounds = array<i64: 1, 32>}, {pipeline_mode = #tpu.pipeline_mode<synchronous>, transform_indices = @transform_7, window_bounds = array<i64: 32, 16>}, {pipeline_mode = #tpu.pipeline_mode<synchronous>, transform_indices = @transform_8, window_bounds = array<i64: 1, 16>}, {pipeline_mode = #tpu.pipeline_mode<synchronous>, transform_indices = @transform_9, window_bounds = array<i64: 1, 16>}, {pipeline_mode = #tpu.pipeline_mode<synchronous>, transform_indices = @transform_10, window_bounds = array<i64: 1, 16>}, {pipeline_mode = #tpu.pipeline_mode<synchronous>, transform_indices = @transform_11, window_bounds = array<i64: 1, 1>}, {transform_indices = @transform_12, window_bounds = array<i64: 1, 128>}]} {
    %c0 = arith.constant 0 : index
    %c0_0 = arith.constant 0 : index
    %0 = vector.load %arg1[%c0, %c0_0] : memref<128x16xf32, #tpu.memory_space<vmem>>, vector<128x16xf32>
    %c0_1 = arith.constant 0 : index
    %c0_2 = arith.constant 0 : index
    %1 = vector.load %arg2[%c0_1, %c0_2] : memref<128x16xf32, #tpu.memory_space<vmem>>, vector<128x16xf32>
    %2 = arith.mulf %0, %1 : vector<128x16xf32>
    %c0_3 = arith.constant 0 : index
    %c0_4 = arith.constant 0 : index
    %3 = vector.load %arg3[%c0_3, %c0_4] : memref<16x64xf32, #tpu.memory_space<vmem>>, vector<16x64xf32>
    %cst = arith.constant dense<0.000000e+00> : vector<128x64xf32>
    %4 = tpu.matmul %0, %3, %cst {dimension_numbers = #tpu.dot_dimension_numbers<[1], [0], [0], [1], [0, 0, 1, 1], [], []>} : vector<128x16xf32>, vector<16x64xf32>, vector<128x64xf32> -> vector<128x64xf32>
    %c0_5 = arith.constant 0 : index
    %c0_6 = arith.constant 0 : index
    %5 = vector.load %arg4[%c0_5, %c0_6] : memref<16x64xf32, #tpu.memory_space<vmem>>, vector<16x64xf32>
    %cst_7 = arith.constant dense<0.000000e+00> : vector<128x64xf32>
    %6 = tpu.matmul %1, %5, %cst_7 {dimension_numbers = #tpu.dot_dimension_numbers<[1], [0], [0], [1], [0, 0, 1, 1], [], []>} : vector<128x16xf32>, vector<16x64xf32>, vector<128x64xf32> -> vector<128x64xf32>
    %7 = arith.addf %4, %6 : vector<128x64xf32>
    %c0_8 = arith.constant 0 : index
    %c0_9 = arith.constant 0 : index
    %8 = vector.load %arg5[%c0_8, %c0_9] : memref<1x64xf32, #tpu.memory_space<vmem>>, vector<1x64xf32>
    %9 = vector.broadcast %8 : vector<1x64xf32> to vector<128x64xf32>
    %10 = arith.addf %7, %9 : vector<128x64xf32>
    %cst_10 = arith.constant 0.000000e+00 : f32
    %11 = vector.broadcast %cst_10 : f32 to vector<128x64xf32>
    %12 = arith.maximumf %10, %11 : vector<128x64xf32>
    %c0_11 = arith.constant 0 : index
    %c0_12 = arith.constant 0 : index
    %13 = vector.load %arg6[%c0_11, %c0_12] : memref<64x32xf32, #tpu.memory_space<vmem>>, vector<64x32xf32>
    %cst_13 = arith.constant dense<0.000000e+00> : vector<128x32xf32>
    %14 = tpu.matmul %12, %13, %cst_13 {dimension_numbers = #tpu.dot_dimension_numbers<[1], [0], [0], [1], [0, 0, 1, 1], [], []>} : vector<128x64xf32>, vector<64x32xf32>, vector<128x32xf32> -> vector<128x32xf32>
    %c0_14 = arith.constant 0 : index
    %c0_15 = arith.constant 0 : index
    %15 = vector.load %arg7[%c0_14, %c0_15] : memref<1x32xf32, #tpu.memory_space<vmem>>, vector<1x32xf32>
    %16 = vector.broadcast %15 : vector<1x32xf32> to vector<128x32xf32>
    %17 = arith.addf %14, %16 : vector<128x32xf32>
    %cst_16 = arith.constant 0.000000e+00 : f32
    %18 = vector.broadcast %cst_16 : f32 to vector<128x32xf32>
    %19 = arith.maximumf %17, %18 : vector<128x32xf32>
    %c0_17 = arith.constant 0 : index
    %c0_18 = arith.constant 0 : index
    %20 = vector.load %arg8[%c0_17, %c0_18] : memref<32x16xf32, #tpu.memory_space<vmem>>, vector<32x16xf32>
    %cst_19 = arith.constant dense<0.000000e+00> : vector<128x16xf32>
    %21 = tpu.matmul %19, %20, %cst_19 {dimension_numbers = #tpu.dot_dimension_numbers<[1], [0], [0], [1], [0, 0, 1, 1], [], []>} : vector<128x32xf32>, vector<32x16xf32>, vector<128x16xf32> -> vector<128x16xf32>
    %c0_20 = arith.constant 0 : index
    %c0_21 = arith.constant 0 : index
    %22 = vector.load %arg9[%c0_20, %c0_21] : memref<1x16xf32, #tpu.memory_space<vmem>>, vector<1x16xf32>
    %23 = vector.broadcast %22 : vector<1x16xf32> to vector<128x16xf32>
    %24 = arith.addf %21, %23 : vector<128x16xf32>
    %cst_22 = arith.constant 0.000000e+00 : f32
    %25 = vector.broadcast %cst_22 : f32 to vector<128x16xf32>
    %26 = arith.maximumf %24, %25 : vector<128x16xf32>
    %c0_23 = arith.constant 0 : index
    %c0_24 = arith.constant 0 : index
    %27 = vector.load %arg10[%c0_23, %c0_24] : memref<1x16xf32, #tpu.memory_space<vmem>>, vector<1x16xf32>
    %cst_25 = arith.constant dense<0.000000e+00> : vector<1x128xf32>
    %28 = tpu.matmul %27, %2, %cst_25 {dimension_numbers = #tpu.dot_dimension_numbers<[1], [1], [0], [0], [0, 0, 1, 0], [], []>} : vector<1x16xf32>, vector<128x16xf32>, vector<1x128xf32> -> vector<1x128xf32>
    %c0_26 = arith.constant 0 : index
    %c0_27 = arith.constant 0 : index
    %29 = vector.load %arg11[%c0_26, %c0_27] : memref<1x16xf32, #tpu.memory_space<vmem>>, vector<1x16xf32>
    %cst_28 = arith.constant dense<0.000000e+00> : vector<1x128xf32>
    %30 = tpu.matmul %29, %26, %cst_28 {dimension_numbers = #tpu.dot_dimension_numbers<[1], [1], [0], [0], [0, 0, 1, 0], [], []>} : vector<1x16xf32>, vector<128x16xf32>, vector<1x128xf32> -> vector<1x128xf32>
    %31 = arith.addf %28, %30 : vector<1x128xf32>
    %c0_29 = arith.constant 0 : index
    %c0_30 = arith.constant 0 : index
    %32 = vector.load %arg12[%c0_29, %c0_30] : memref<1x1xf32, #tpu.memory_space<vmem>>, vector<1x1xf32>
    %33 = vector.broadcast %32 : vector<1x1xf32> to vector<1x128xf32>
    %34 = arith.addf %31, %33 : vector<1x128xf32>
    %35 = arith.negf %34 : vector<1x128xf32>
    %36 = math.exp %35 : vector<1x128xf32>
    %cst_31 = arith.constant 1.000000e+00 : f32
    %37 = vector.broadcast %cst_31 : f32 to vector<1x128xf32>
    %38 = arith.addf %37, %36 : vector<1x128xf32>
    %39 = arith.divf %37, %38 : vector<1x128xf32>
    %c0_32 = arith.constant 0 : index
    %c0_33 = arith.constant 0 : index
    %40 = vector.load %arg13[%c0_32, %c0_33] : memref<1x128xf32, #tpu.memory_space<vmem>>, vector<1x128xf32>
    tpu.vector_store %arg13[%c0_32, %c0_33], %39 {strides = array<i32>} : memref<1x128xf32, #tpu.memory_space<vmem>>, vector<1x128xf32>,
    return
  }
  func.func @transform_0(%arg0: i32) -> (i32, i32) {
    %c0_i32 = arith.constant 0 : i32
    %c0_i32_0 = arith.constant 0 : i32
    return %arg0, %c0_i32 : i32, i32
  }
  func.func @transform_1(%arg0: i32) -> (i32, i32) {
    %c0_i32 = arith.constant 0 : i32
    %c0_i32_0 = arith.constant 0 : i32
    return %arg0, %c0_i32 : i32, i32
  }
  func.func @transform_2(%arg0: i32) -> (i32, i32) {
    %c0_i32 = arith.constant 0 : i32
    %c0_i32_0 = arith.constant 0 : i32
    %c0_i32_1 = arith.constant 0 : i32
    return %c0_i32, %c0_i32_0 : i32, i32
  }
  func.func @transform_3(%arg0: i32) -> (i32, i32) {
    %c0_i32 = arith.constant 0 : i32
    %c0_i32_0 = arith.constant 0 : i32
    %c0_i32_1 = arith.constant 0 : i32
    return %c0_i32, %c0_i32_0 : i32, i32
  }
  func.func @transform_4(%arg0: i32) -> (i32, i32) {
    %c0_i32 = arith.constant 0 : i32
    %c0_i32_0 = arith.constant 0 : i32
    %c0_i32_1 = arith.constant 0 : i32
    return %c0_i32, %c0_i32_0 : i32, i32
  }
  func.func @transform_5(%arg0: i32) -> (i32, i32) {
    %c0_i32 = arith.constant 0 : i32
    %c0_i32_0 = arith.constant 0 : i32
    %c0_i32_1 = arith.constant 0 : i32
    return %c0_i32, %c0_i32_0 : i32, i32
  }
  func.func @transform_6(%arg0: i32) -> (i32, i32) {
    %c0_i32 = arith.constant 0 : i32
    %c0_i32_0 = arith.constant 0 : i32
    %c0_i32_1 = arith.constant 0 : i32
    return %c0_i32, %c0_i32_0 : i32, i32
  }
  func.func @transform_7(%arg0: i32) -> (i32, i32) {
    %c0_i32 = arith.constant 0 : i32
    %c0_i32_0 = arith.constant 0 : i32
    %c0_i32_1 = arith.constant 0 : i32
    return %c0_i32, %c0_i32_0 : i32, i32
  }
  func.func @transform_8(%arg0: i32) -> (i32, i32) {
    %c0_i32 = arith.constant 0 : i32
    %c0_i32_0 = arith.constant 0 : i32
    %c0_i32_1 = arith.constant 0 : i32
    return %c0_i32, %c0_i32_0 : i32, i32
  }
  func.func @transform_9(%arg0: i32) -> (i32, i32) {
    %c0_i32 = arith.constant 0 : i32
    %c0_i32_0 = arith.constant 0 : i32
    %c0_i32_1 = arith.constant 0 : i32
    return %c0_i32, %c0_i32_0 : i32, i32
  }
  func.func @transform_10(%arg0: i32) -> (i32, i32) {
    %c0_i32 = arith.constant 0 : i32
    %c0_i32_0 = arith.constant 0 : i32
    %c0_i32_1 = arith.constant 0 : i32
    return %c0_i32, %c0_i32_0 : i32, i32
  }
  func.func @transform_11(%arg0: i32) -> (i32, i32) {
    %c0_i32 = arith.constant 0 : i32
    %c0_i32_0 = arith.constant 0 : i32
    %c0_i32_1 = arith.constant 0 : i32
    return %c0_i32, %c0_i32_0 : i32, i32
  }
  func.func @transform_12(%arg0: i32) -> (i32, i32) {
    %c0_i32 = arith.constant 0 : i32
    %c0_i32_0 = arith.constant 0 : i32
    return %c0_i32, %arg0 : i32, i32
  }
}

</mosaic_0001>

<bundles_post_ra>
// kernel: neumf_forward.1
= control target key start
LH: loop header
LB: loop body
LE: loop exit
PB: predicated region body
PF: predicated region fallthrough
CT: control target
= control target key end

     0   :  { %s1921_s0 = inlined_call_operand.vmem [shape: f32[512,16], index: 0, kind: input, shape index: {}]   ;;  %s1922_s1 = inlined_call_operand.vmem [shape: f32[512,16], index: 1, kind: input, shape index: {}]   ;;  %s1923_s2 = inlined_call_operand.vmem [shape: f32[16,64], index: 2, kind: input, shape index: {}]   ;;  %s1924_s3 = inlined_call_operand.vmem [shape: f32[16,64], index: 3, kind: input, shape index: {}]   ;;  %s1925_s4 = inlined_call_operand.vmem [shape: f32[1,64], index: 4, kind: input, shape index: {}]   ;;  %s1926_s5 = inlined_call_operand.vmem [shape: f32[64,32], index: 5, kind: input, shape index: {}]   ;;  %s1927_s6 = inlined_call_operand.vmem [shape: f32[1,32], index: 6, kind: input, shape index: {}]   ;;  %s1928_s7 = inlined_call_operand.vmem [shape: f32[32,16], index: 7, kind: input, shape index: {}]   ;;  %s1929_s8 = inlined_call_operand.vmem [shape: f32[1,16], index: 8, kind: input, shape index: {}]   ;;  %s1930_s9 = inlined_call_operand.vmem [shape: f32[1,16], index: 9, kind: input, shape index: {}]   ;;  %s1931_s10 = inlined_call_operand.vmem [shape: f32[1,16], index: 10, kind: input, shape index: {}]   ;;  %s1932_s11 = inlined_call_operand.<no memory space> [shape: f32[1,1], index: 11, kind: input, shape index: {}]   ;;  %s1933_s12 = inlined_call_operand.hbm [shape: f32[1,512], index: 12, kind: output, shape index: {}]  }
   0x1   :  { %1934 = sst [smem:[#allocation6_spill]] %s1921_s0  ;;  %v17_v0 = vstv %s1932_s11 }
   0x2   :  { %18 = vst [vmem:[#allocation2] sm:$0x1] %v17_v0 }
   0x3   :  { %19 = vsyncpa [#allocation4], 0 }
   0x4   :  { %21 = vsyncpa [#allocation4 + $0x1], 0  ;;  %s1574_s23 = smov 0   ;;  %s1576_s24 = smov 0  }
   0x5   :  { %s1578_s25 = smov 0   ;;  %s1580_s26 = smov 0  }
   0x6 LB: > { %s1595_s11 = sadd.s32 4294967295, %s1503_s26   ;;  %s1284_s27 = sadd.s32 4294967294, %s1503_s26   ;;  %s1503_s26 = sphi %s1580_s26, %s1941_s26   ;;  %s1499_s25 = sphi %s1578_s25, %s1940_s25   ;;  %s1495_s24 = sphi %s1576_s24, %s1939_s24   ;;  %s1491_s23 = sphi %s1574_s23, %s1938_s23  }
   0x7   : > { %s1599_s28 = sadd.s32 1, %s1503_s26   ;;  %s296_s29 = sadd.s32 1, %s1499_s25 }
   0x8   : > { %s293_s30 = ssub.s32 %s1503_s26, %s1599_s28  ;;  %p306_p0 = scmp.ne.s32.totalorder %s1499_s25, %s1495_s24 }
   0x9   : > { %p294_p1 = scmp.eq.s32.totalorder %s293_s30, 0  ;;  %p307_p2 = scmp.eq.s32.totalorder %s1595_s11, 3 }
   0xa   : > { %p312_p3 = scmp.ne.s32.totalorder %s1495_s24, %s1491_s23  ;;  %p313_p4 = scmp.eq.s32.totalorder %s1284_s27, 3 }
   0xb   : > { %s1610_s13 = scalar_select %p294_p1, %s1499_s25, %s296_s29  }
   0xc   : > { %p1612_p5 = por %p307_p2, %p306_p0  ;;  %p1616_p6 = por %p313_p4, %p312_p3 }
   0xd   : > { %p1287_p7 = scmp.ge.s32.totalorder %s1503_s26, 1  ;;  %p379_p8 = scmp.lt.s32.totalorder %s1503_s26, 5 }
   0xf   : > { %p380_p9 = pnand %p1287_p7, %p379_p8 }
  0x10   : > { %s1288_s22 = sshll.u32 (!%p380_p9), %s1595_s11, 4  ;;  %s1937_s0 = sld [smem:[#allocation6_spill]] (!%p380_p9) }
  0x11   : > { %383 = sbr.rel (%p380_p9) target bundleno = 775 (0x307), region = 68  ;;  %p426_p10 = scmp.lt.s32.totalorder (!%p380_p9), %s1288_s22, 63 }
  0x12   : > { %s1213_s20 = scalar_lea.hbm (!%p380_p9), %s1933_s12, %s1595_s11  ;;  %s1461_s19 = scalar_lea.hbm (!%p380_p9), %s1933_s12, 4 }
  0x13   : > { %s1217_s29 = sshll.u32 (!%p380_p9), %s1213_s20, 4  ;;  %s1218_s29 = int_to_ptr.hbm [resolvable:$true] %s1217_s29 }
  0x14   : > { %s1455_s11 = sshra.s32 (!%p380_p9), %s1218_s29, 4  ;;  %s1456_s11 = int_to_ptr.hbm [resolvable:$true] %s1455_s11 }
  0x15   : > { %s1457_s16 = scalar_lea.hbm (!%p380_p9), %s1456_s11, 1  ;;  %p1462_p0 = scmp.lt.s32.totalorder (!%p380_p9), %s1456_s11, %s1933_s12 }
  0x16   : > { %v488_v1 = vld [vmem:[%s1924_s3 + $0x8] sm:$0xff]  ;;  %v487_v3 = vld [vmem:[%s1924_s3] sm:$0xff]  ;;  %s1943_s22 = smov (!%p426_p10, %s1288_s22), 63  ;;  %vm489_vm0 = vcmask 130048   ;;  %v759_v35 = vld [vmem:[%s1926_s5 + $0x38] sm:$0xff]  ;;  %vm764_vm1 = vcmask 523264   ;;  %p1458_p11 = scmp.ne.s32.totalorder %s1456_s11, %s1457_s16 }
  0x17   : > { %v486_v2 = vld [vmem:[%s1923_s2 + $0x8] sm:$0xff]  ;;  %552 = vmatpush.msra.mxu0 %v488_v1  ;;  %v485_v4 = vld [vmem:[%s1923_s2] sm:$0xff]  ;;  %s1289_s30 = sshll.u32 %s1943_s22, 3  ;;  %v758_v36 = vld [vmem:[%s1926_s5 + $0x30] sm:$0xff]  ;;  %821 = vmatpush.msra.mxu2 %v759_v35  ;;  %vm902_vm2 = vcmask 261120   ;;  %p1463_p1 = scmp.lt.s32.totalorder %s1461_s19, %s1457_s16 }
  0x18   : > { %665 = vmatpush.msra.mxu1 %v486_v2  ;;  %s1638_s18 = scalar_lea.vmem %s1922_s1, %s1289_s30  ;;  %s1643_s21 = scalar_lea.vmem %s1937_s0, %s1289_s30  ;;  %v757_v42 = vld [vmem:[%s1926_s5 + $0x28] sm:$0xff]  ;;  %v756_v43 = vld [vmem:[%s1926_s5 + $0x20] sm:$0xff]  ;;  %v755_v48 = vld [vmem:[%s1926_s5 + $0x18] sm:$0xff] }
  0x19   : > { %553 = vmatpush.msra.mxu0 %v487_v3  ;;  %v453_v5 = vld [vmem:[%s1638_s18] sm:$0xff]  ;;  %v454_v7 = vld [vmem:[%s1638_s18 + $0x8] sm:$0xff]  ;;  %v455_v10 = vld [vmem:[%s1638_s18 + $0x10] sm:$0xff]  ;;  %822 = vmatpush.msra.mxu2 %v758_v36  ;;  %p1459_p12 = pnand %p1458_p11, %p1612_p5  ;;  %p1464_p2 = por %p1463_p1, %p1462_p0 }
  0x1a   : > { %666 = vmatpush.msra.mxu1 %v485_v4  ;;  %v437_v6 = vld [vmem:[%s1643_s21] sm:$0xff]  ;;  %1292 = vmatmul.msk.f32.vlgmr.msra.gmra.mxu0 %vm489_vm0, %v453_v5  ;;  %v438_v9 = vld [vmem:[%s1643_s21 + $0x8] sm:$0xff]  ;;  %v439_v11 = vld [vmem:[%s1643_s21 + $0x10] sm:$0xff] }
  0x1b   : > { %v1649_v8 = vmul.f32 %v453_v5, %v437_v6  ;;  %1308 = vmatmul.msk.f32.vlgmr.msra.gmra.mxu1 %vm489_vm0, %v437_v6  ;;  %v1655_v12 = vmul.f32 %v454_v7, %v438_v9  ;;  %v1657_v13 = vmul.f32 %v455_v10, %v439_v11  ;;  %v456_v14 = vld [vmem:[%s1638_s18 + $0x18] sm:$0xff]  ;;  %v457_v17 = vld [vmem:[%s1638_s18 + $0x20] sm:$0xff]  ;;  %v458_v20 = vld [vmem:[%s1638_s18 + $0x28] sm:$0xff]  ;;  %823 = vmatpush.msra.mxu2 %v757_v42  ;;  %p1460_p13 = pneg %p1459_p12 }
  0x1c   : > { %v440_v15 = vld [vmem:[%s1643_s21 + $0x18] sm:$0xff]  ;;  %v441_v18 = vld [vmem:[%s1643_s21 + $0x20] sm:$0xff]  ;;  %v442_v21 = vld [vmem:[%s1643_s21 + $0x28] sm:$0xff] }
  0x1d   : > { %v1661_v16 = vmul.f32 %v456_v14, %v440_v15  ;;  %v1665_v19 = vmul.f32 %v457_v17, %v441_v18  ;;  %v1671_v22 = vmul.f32 %v458_v20, %v442_v21  ;;  %v459_v23 = vld [vmem:[%s1638_s18 + $0x30] sm:$0xff]  ;;  %v460_v26 = vld [vmem:[%s1638_s18 + $0x38] sm:$0xff]  ;;  %v461_v29 = vld [vmem:[%s1638_s18 + $0x40] sm:$0xff]  ;;  %824 = vmatpush.msra.mxu2 %v756_v43  ;;  %p1465_p3 = pnand %p1464_p2, %p1460_p13 }
  0x1e   : > { %v443_v24 = vld [vmem:[%s1643_s21 + $0x30] sm:$0xff]  ;;  %v444_v27 = vld [vmem:[%s1643_s21 + $0x38] sm:$0xff]  ;;  %v445_v30 = vld [vmem:[%s1643_s21 + $0x40] sm:$0xff] }
  0x1f   : > { %v1677_v25 = vmul.f32 %v459_v23, %v443_v24  ;;  %v1683_v28 = vmul.f32 %v460_v26, %v444_v27  ;;  %v462_v31 = vld [vmem:[%s1638_s18 + $0x48] sm:$0xff]  ;;  %v463_v33 = vld [vmem:[%s1638_s18 + $0x50] sm:$0xff]  ;;  %v464_v37 = vld [vmem:[%s1638_s18 + $0x58] sm:$0xff]  ;;  %825 = vmatpush.msra.mxu2 %v755_v48  ;;  %v477_v60 = vmul.f32 %v461_v29, %v445_v30 }
  0x20   : > { %v446_v32 = vld [vmem:[%s1643_s21 + $0x48] sm:$0xff]  ;;  %v447_v34 = vld [vmem:[%s1643_s21 + $0x50] sm:$0xff]  ;;  %v448_v38 = vld [vmem:[%s1643_s21 + $0x58] sm:$0xff] }
  0x21   : > { %v468_v39 = vld [vmem:[%s1638_s18 + $0x78] sm:$0xff]  ;;  %v467_v44 = vld [vmem:[%s1638_s18 + $0x70] sm:$0xff]  ;;  %v465_v47 = vld [vmem:[%s1638_s18 + $0x60] sm:$0xff]  ;;  %v480_v57 = vmul.f32 %v464_v37, %v448_v38  ;;  %v479_v58 = vmul.f32 %v463_v33, %v447_v34  ;;  %v478_v59 = vmul.f32 %v462_v31, %v446_v32 }
  0x22   : > { %1293 = vmatmul.msk.f32.gmra.mxu0 %vm489_vm0, %v454_v7  ;;  %v452_v40 = vld [vmem:[%s1643_s21 + $0x78] sm:$0xff]  ;;  %v451_v45 = vld [vmem:[%s1643_s21 + $0x70] sm:$0xff]  ;;  %v449_v49 = vld [vmem:[%s1643_s21 + $0x60] sm:$0xff] }
  0x23   : > { %1309 = vmatmul.msk.f32.gmra.mxu1 %vm489_vm0, %v438_v9  ;;  %v484_v41 = vmul.f32 %v468_v39, %v452_v40  ;;  %v483_v46 = vmul.f32 %v467_v44, %v451_v45  ;;  %v466_v50 = vld [vmem:[%s1638_s18 + $0x68] sm:$0xff]  ;;  %v754_v53 = vld [vmem:[%s1926_s5 + $0x10] sm:$0xff]  ;;  %v481_v55 = vmul.f32 %v465_v47, %v449_v49  ;;  %v752_v56 = vld [vmem:[%s1926_s5] sm:$0xff]  ;;  %s423_s18 = sand.u32 1, %s1495_s24  }
  0x24   : > { %v450_v51 = vld [vmem:[%s1643_s21 + $0x68] sm:$0xff]  ;;  %826 = vmatpush.msra.mxu2 %v754_v53  ;;  %v1762_v61 = vld [vmem:[%s1925_s4] ss:$0 sm:$0xff]  ;;  %s424_s22 = scalar_lea.vmem [#allocation3], %s423_s18  ;;  %s1205_s30 = scalar_lea.sflag [#allocation4], %s423_s18 }
  0x25   : > { %1373 = vmatpush.xpose.msk.msrb.mxu1 %vm489_vm0, %v484_v41  ;;  %v482_v52 = vmul.f32 %v466_v50, %v450_v51  ;;  %v753_v54 = vld [vmem:[%s1926_s5 + $0x8] sm:$0xff]  ;;  %s1215_s27 = sshll.u32 %s424_s22, 4  ;;  %s1216_s27 = int_to_ptr.vmem [resolvable:$true] %s1215_s27 }
  0x26   : > { %827 = vmatpush.msra.mxu2 %v753_v54 }
  0x28   : > { %828 = vmatpush.msra.mxu2 %v752_v56 }
  0x29   : > { %1374 = vmatpush.xpose.msk.msrb.mxu1 %vm489_vm0, %v483_v46 }
  0x2a   : > { %1294 = vmatmul.msk.f32.gmra.mxu0 %vm489_vm0, %v455_v10 }
  0x2b   : > { %1310 = vmatmul.msk.f32.gmra.mxu1 %vm489_vm0, %v439_v11 }
  0x2d   : > { %1375 = vmatpush.xpose.msk.msrb.mxu1 %vm489_vm0, %v482_v52 }
  0x31   : > { %1376 = vmatpush.xpose.msk.msrb.mxu1 %vm489_vm0, %v481_v55 }
  0x32   : > { %1295 = vmatmul.msk.f32.gmra.mxu0 %vm489_vm0, %v456_v14 }
  0x33   : > { %1311 = vmatmul.msk.f32.gmra.mxu1 %vm489_vm0, %v440_v15 }
  0x35   : > { %1377 = vmatpush.xpose.msk.msrb.mxu1 %vm489_vm0, %v480_v57 }
  0x39   : > { %1378 = vmatpush.xpose.msk.msrb.mxu1 %vm489_vm0, %v479_v58  ;;  %v897_v58 = vld [vmem:[%s1928_s7 + $0x18] sm:$0xff] }
  0x3a   : > { %1296 = vmatmul.msk.f32.gmra.mxu0 %vm489_vm0, %v457_v17  ;;  %963 = vmatpush.msra.mxu3 %v897_v58 }
  0x3b   : > { %1312 = vmatmul.msk.f32.gmra.mxu1 %vm489_vm0, %v441_v18 }
  0x3d   : > { %1379 = vmatpush.xpose.msk.msrb.mxu1 %vm489_vm0, %v478_v59 }
  0x41   : > { %1380 = vmatpush.xpose.msk.msrb.mxu1 %vm489_vm0, %v477_v60 }
  0x42   : > { %1297 = vmatmul.msk.f32.gmra.mxu0 %vm489_vm0, %v458_v20 }
  0x43   : > { %1313 = vmatmul.msk.f32.gmra.mxu1 %vm489_vm0, %v442_v21 }
  0x45   : > { %1381 = vmatpush.xpose.msk.msrb.mxu1 %vm489_vm0, %v1683_v28 }
  0x49   : > { %1382 = vmatpush.xpose.msk.msrb.mxu1 %vm489_vm0, %v1677_v25 }
  0x4a   : > { %1298 = vmatmul.msk.f32.gmra.mxu0 %vm489_vm0, %v459_v23 }
  0x4b   : > { %1314 = vmatmul.msk.f32.gmra.mxu1 %vm489_vm0, %v443_v24 }
  0x4d   : > { %1383 = vmatpush.xpose.msk.msrb.mxu1 %vm489_vm0, %v1671_v22 }
  0x51   : > { %1384 = vmatpush.xpose.msk.msrb.mxu1 %vm489_vm0, %v1665_v19 }
  0x52   : > { %1299 = vmatmul.msk.f32.gmra.mxu0 %vm489_vm0, %v460_v26 }
  0x53   : > { %1315 = vmatmul.msk.f32.gmra.mxu1 %vm489_vm0, %v444_v27 }
  0x55   : > { %1385 = vmatpush.xpose.msk.msrb.mxu1 %vm489_vm0, %v1661_v16 }
  0x59   : > { %1386 = vmatpush.xpose.msk.msrb.mxu1 %vm489_vm0, %v1657_v13 }
  0x5a   : > { %1300 = vmatmul.msk.f32.gmra.mxu0 %vm489_vm0, %v461_v29 }
  0x5b   : > { %1316 = vmatmul.msk.f32.gmra.mxu1 %vm489_vm0, %v445_v30 }
  0x5d   : > { %1387 = vmatpush.xpose.msk.msrb.mxu1 %vm489_vm0, %v1655_v12 }
  0x61   : > { %1388 = vmatpush.xpose.msk.msrb.mxu1 %vm489_vm0, %v1649_v8 }
  0x62   : > { %1301 = vmatmul.msk.f32.gmra.mxu0 %vm489_vm0, %v462_v31 }
  0x63   : > { %1317 = vmatmul.msk.f32.gmra.mxu1 %vm489_vm0, %v446_v32 }
  0x6a   : > { %1302 = vmatmul.msk.f32.gmra.mxu0 %vm489_vm0, %v463_v33 }
  0x6b   : > { %1318 = vmatmul.msk.f32.gmra.mxu1 %vm489_vm0, %v447_v34 }
  0x72   : > { %1303 = vmatmul.msk.f32.gmra.mxu0 %vm489_vm0, %v464_v37 }
  0x73   : > { %1319 = vmatmul.msk.f32.gmra.mxu1 %vm489_vm0, %v448_v38 }
  0x7a   : > { %1304 = vmatmul.msk.f32.gmra.mxu0 %vm489_vm0, %v465_v47 }
  0x7b   : > { %1320 = vmatmul.msk.f32.gmra.mxu1 %vm489_vm0, %v449_v49 }
  0x82   : > { %1305 = vmatmul.msk.f32.gmra.mxu0 %vm489_vm0, %v466_v50 }
  0x83   : > { %1321 = vmatmul.msk.f32.gmra.mxu1 %vm489_vm0, %v450_v51 }
  0x8a   : > { %1306 = vmatmul.msk.f32.gmra.mxu0 %vm489_vm0, %v467_v44 }
  0x8b   : > { %1322 = vmatmul.msk.f32.gmra.mxu1 %vm489_vm0, %v451_v45 }
  0x92   : > { %1307 = vmatmul.msk.f32.gmra.mxu0 %vm489_vm0, %v468_v39 }
  0x93   : > { %1323 = vmatmul.msk.f32.gmra.mxu1 %vm489_vm0, %v452_v40 }
  0x97   : > { %v555_v62 = vpop.f32.mrf.mxu0 }
  0x98   : > { %v668_v63 = vpop.f32.mrf.mxu1 }
  0x99   : > { %v669_v0 = vadd.f32 %v668_v63, %v555_v62 }
  0x9b   : > { %v720_v1 = vadd.f32 %v1762_v61, %v669_v0 }
  0x9d   : > { %v736_v2 = vmax.f32 %v720_v1, 0.0 }
  0x9f   : > { %1324 = vmatmul.msk.f32.vlgmr.msra.gmra.mxu2 %vm764_vm1, %v736_v2  ;;  %v558_v3 = vpop.f32.mrf.mxu0 }
  0xa0   : > { %v671_v4 = vpop.f32.mrf.mxu1 }
  0xa1   : > { %v672_v5 = vadd.f32 %v671_v4, %v558_v3  ;;  %v896_v4 = vld [vmem:[%s1928_s7 + $0x10] sm:$0xff] }
  0xa2   : > { %964 = vmatpush.msra.mxu3 %v896_v4 }
  0xa3   : > { %v721_v6 = vadd.f32 %v1762_v61, %v672_v5 }
  0xa5   : > { %v737_v7 = vmax.f32 %v721_v6, 0.0  ;;  %v895_v6 = vld [vmem:[%s1928_s7 + $0x8] sm:$0xff] }
  0xa6   : > { %965 = vmatpush.msra.mxu3 %v895_v6 }
  0xa7   : > { %1325 = vmatmul.msk.f32.gmra.mxu2 %vm764_vm1, %v737_v7  ;;  %v561_v9 = vpop.f32.mrf.mxu0 }
  0xa8   : > { %v674_v10 = vpop.f32.mrf.mxu1 }
  0xa9   : > { %v675_v11 = vadd.f32 %v674_v10, %v561_v9  ;;  %v894_v9 = vld [vmem:[%s1928_s7] sm:$0xff] }
  0xaa   : > { %966 = vmatpush.msra.mxu3 %v894_v9 }
  0xab   : > { %v722_v14 = vadd.f32 %v1762_v61, %v675_v11 }
  0xad   : > { %v738_v15 = vmax.f32 %v722_v14, 0.0 }
  0xaf   : > { %1326 = vmatmul.msk.f32.gmra.mxu2 %vm764_vm1, %v738_v15  ;;  %v564_v17 = vpop.f32.mrf.mxu0 }
  0xb0   : > { %v677_v18 = vpop.f32.mrf.mxu1 }
  0xb1   : > { %v678_v19 = vadd.f32 %v677_v18, %v564_v17 }
  0xb3   : > { %v723_v16 = vadd.f32 %v1762_v61, %v678_v19 }
  0xb5   : > { %v739_v20 = vmax.f32 %v723_v16, 0.0 }
  0xb7   : > { %1327 = vmatmul.msk.f32.gmra.mxu2 %vm764_vm1, %v739_v20  ;;  %v567_v13 = vpop.f32.mrf.mxu0 }
  0xb8   : > { %v680_v21 = vpop.f32.mrf.mxu1 }
  0xb9   : > { %v681_v22 = vadd.f32 %v680_v21, %v567_v13  ;;  %v1825_v21 = vld [vmem:[%s1927_s6] ss:$0 sm:$0xff] }
  0xbb   : > { %v724_v23 = vadd.f32 %v1762_v61, %v681_v22 }
  0xbd   : > { %v740_v24 = vmax.f32 %v724_v23, 0.0 }
  0xbf   : > { %1328 = vmatmul.msk.f32.gmra.mxu2 %vm764_vm1, %v740_v24  ;;  %v570_v12 = vpop.f32.mrf.mxu0 }
  0xc0   : > { %v683_v25 = vpop.f32.mrf.mxu1 }
  0xc1   : > { %v684_v26 = vadd.f32 %v683_v25, %v570_v12 }
  0xc3   : > { %v725_v27 = vadd.f32 %v1762_v61, %v684_v26 }
  0xc5   : > { %v741_v28 = vmax.f32 %v725_v27, 0.0 }
  0xc7   : > { %1329 = vmatmul.msk.f32.gmra.mxu2 %vm764_vm1, %v741_v28  ;;  %v573_v8 = vpop.f32.mrf.mxu0 }
  0xc8   : > { %v686_v29 = vpop.f32.mrf.mxu1 }
  0xc9   : > { %v687_v30 = vadd.f32 %v686_v29, %v573_v8 }
  0xcb   : > { %v726_v31 = vadd.f32 %v1762_v61, %v687_v30 }
  0xcd   : > { %v742_v32 = vmax.f32 %v726_v31, 0.0 }
  0xcf   : > { %1330 = vmatmul.msk.f32.gmra.mxu2 %vm764_vm1, %v742_v32  ;;  %v576_v33 = vpop.f32.mrf.mxu0 }
  0xd0   : > { %v689_v34 = vpop.f32.mrf.mxu1 }
  0xd1   : > { %v690_v35 = vadd.f32 %v689_v34, %v576_v33 }
  0xd3   : > { %v727_v36 = vadd.f32 %v1762_v61, %v690_v35 }
  0xd5   : > { %v743_v37 = vmax.f32 %v727_v36, 0.0 }
  0xd7   : > { %1331 = vmatmul.msk.f32.gmra.mxu2 %vm764_vm1, %v743_v37  ;;  %v579_v38 = vpop.f32.mrf.mxu0 }
  0xd8   : > { %v692_v39 = vpop.f32.mrf.mxu1 }
  0xd9   : > { %v693_v40 = vadd.f32 %v692_v39, %v579_v38 }
  0xdb   : > { %v728_v41 = vadd.f32 %v1762_v61, %v693_v40 }
  0xdd   : > { %v744_v42 = vmax.f32 %v728_v41, 0.0 }
  0xdf   : > { %1332 = vmatmul.msk.f32.gmra.mxu2 %vm764_vm1, %v744_v42  ;;  %v582_v43 = vpop.f32.mrf.mxu0 }
  0xe0   : > { %v695_v44 = vpop.f32.mrf.mxu1 }
  0xe1   : > { %v696_v45 = vadd.f32 %v695_v44, %v582_v43 }
  0xe3   : > { %v729_v46 = vadd.f32 %v1762_v61, %v696_v45 }
  0xe5   : > { %v745_v47 = vmax.f32 %v729_v46, 0.0 }
  0xe7   : > { %1333 = vmatmul.msk.f32.gmra.mxu2 %vm764_vm1, %v745_v47  ;;  %v585_v48 = vpop.f32.mrf.mxu0 }
  0xe8   : > { %v698_v49 = vpop.f32.mrf.mxu1 }
  0xe9   : > { %v699_v50 = vadd.f32 %v698_v49, %v585_v48 }
  0xeb   : > { %v730_v51 = vadd.f32 %v1762_v61, %v699_v50 }
  0xed   : > { %v746_v52 = vmax.f32 %v730_v51, 0.0 }
  0xef   : > { %1334 = vmatmul.msk.f32.gmra.mxu2 %vm764_vm1, %v746_v52  ;;  %v588_v53 = vpop.f32.mrf.mxu0 }
  0xf0   : > { %v701_v54 = vpop.f32.mrf.mxu1 }
  0xf1   : > { %v702_v55 = vadd.f32 %v701_v54, %v588_v53 }
  0xf3   : > { %v731_v56 = vadd.f32 %v1762_v61, %v702_v55 }
  0xf5   : > { %v747_v57 = vmax.f32 %v731_v56, 0.0 }
  0xf7   : > { %1335 = vmatmul.msk.f32.gmra.mxu2 %vm764_vm1, %v747_v57  ;;  %v591_v59 = vpop.f32.mrf.mxu0 }
  0xf8   : > { %v704_v60 = vpop.f32.mrf.mxu1 }
  0xf9   : > { %v705_v62 = vadd.f32 %v704_v60, %v591_v59 }
  0xfb   : > { %v732_v63 = vadd.f32 %v1762_v61, %v705_v62 }
  0xfd   : > { %v748_v0 = vmax.f32 %v732_v63, 0.0 }
  0xff   : > { %1336 = vmatmul.msk.f32.gmra.mxu2 %vm764_vm1, %v748_v0  ;;  %v594_v1 = vpop.f32.mrf.mxu0 }
 0x100   : > { %v707_v2 = vpop.f32.mrf.mxu1 }
 0x101   : > { %v708_v3 = vadd.f32 %v707_v2, %v594_v1 }
 0x103   : > { %v733_v5 = vadd.f32 %v1762_v61, %v708_v3 }
 0x105   : > { %v749_v7 = vmax.f32 %v733_v5, 0.0 }
 0x107   : > { %1337 = vmatmul.msk.f32.gmra.mxu2 %vm764_vm1, %v749_v7  ;;  %v597_v10 = vpop.f32.mrf.mxu0 }
 0x108   : > { %v710_v11 = vpop.f32.mrf.mxu1 }
 0x109   : > { %v711_v14 = vadd.f32 %v710_v11, %v597_v10 }
 0x10b   : > { %v734_v15 = vadd.f32 %v1762_v61, %v711_v14 }
 0x10d   : > { %v750_v17 = vmax.f32 %v734_v15, 0.0 }
 0x10f   : > { %1338 = vmatmul.msk.f32.gmra.mxu2 %vm764_vm1, %v750_v17  ;;  %v600_v18 = vpop.f32.mrf.mxu0 }
 0x110   : > { %v713_v19 = vpop.f32.mrf.mxu1 }
 0x111   : > { %v714_v16 = vadd.f32 %v713_v19, %v600_v18 }
 0x113   : > { %v735_v20 = vadd.f32 %v1762_v61, %v714_v16 }
 0x115   : > { %v751_v13 = vmax.f32 %v735_v20, 0.0 }
 0x117   : > { %1339 = vmatmul.msk.f32.gmra.mxu2 %vm764_vm1, %v751_v13 }
 0x122   : > { %v830_v22 = vpop.f32.mrf.mxu2 }
 0x123   : > { %v831_v23 = vadd.f32 %v1825_v21, %v830_v22 }
 0x125   : > { %v878_v24 = vmax.f32 %v831_v23, 0.0 }
 0x127   : > { %1340 = vmatmul.msk.f32.vlgmr.msra.gmra.mxu3 %vm902_vm2, %v878_v24 }
 0x12a   : > { %v833_v12 = vpop.f32.mrf.mxu2 }
 0x12b   : > { %v834_v25 = vadd.f32 %v1825_v21, %v833_v12 }
 0x12d   : > { %v879_v26 = vmax.f32 %v834_v25, 0.0 }
 0x12f   : > { %1341 = vmatmul.msk.f32.gmra.mxu3 %vm902_vm2, %v879_v26 }
 0x132   : > { %v836_v61 = vpop.f32.mrf.mxu2 }
 0x133   : > { %v837_v27 = vadd.f32 %v1825_v21, %v836_v61 }
 0x135   : > { %v880_v28 = vmax.f32 %v837_v27, 0.0 }
 0x137   : > { %1342 = vmatmul.msk.f32.gmra.mxu3 %vm902_vm2, %v880_v28 }
 0x13a   : > { %v839_v8 = vpop.f32.mrf.mxu2 }
 0x13b   : > { %v840_v29 = vadd.f32 %v1825_v21, %v839_v8 }
 0x13d   : > { %v881_v30 = vmax.f32 %v840_v29, 0.0 }
 0x13f   : > { %1343 = vmatmul.msk.f32.gmra.mxu3 %vm902_vm2, %v881_v30 }
 0x142   : > { %v842_v31 = vpop.f32.mrf.mxu2 }
 0x143   : > { %v843_v32 = vadd.f32 %v1825_v21, %v842_v31 }
 0x145   : > { %v882_v33 = vmax.f32 %v843_v32, 0.0 }
 0x147   : > { %1344 = vmatmul.msk.f32.gmra.mxu3 %vm902_vm2, %v882_v33 }
 0x14a   : > { %v845_v34 = vpop.f32.mrf.mxu2 }
 0x14b   : > { %v846_v35 = vadd.f32 %v1825_v21, %v845_v34 }
 0x14d   : > { %v883_v36 = vmax.f32 %v846_v35, 0.0 }
 0x14f   : > { %1345 = vmatmul.msk.f32.gmra.mxu3 %vm902_vm2, %v883_v36 }
 0x152   : > { %v848_v37 = vpop.f32.mrf.mxu2 }
 0x153   : > { %v849_v38 = vadd.f32 %v1825_v21, %v848_v37 }
 0x155   : > { %v884_v39 = vmax.f32 %v849_v38, 0.0 }
 0x157   : > { %1346 = vmatmul.msk.f32.gmra.mxu3 %vm902_vm2, %v884_v39  ;;  %v1032_v39 = vld [vmem:[%s1930_s9] sm:$0x1] }
 0x158   : > { %1389 = vmatmul.msk.f32.vlgmr.msrb.gmra.mxu1 %vm489_vm0, %v1032_v39 }
 0x15a   : > { %v851_v40 = vpop.f32.mrf.mxu2 }
 0x15b   : > { %v852_v41 = vadd.f32 %v1825_v21, %v851_v40  ;;  %v1176_v40 = vld [vmem:[#allocation2] sm:$0x1] }
 0x15d   : > { %v885_v42 = vmax.f32 %v852_v41, 0.0  ;;  %v1505_v41 = vmov 0  }
 0x15e   : > { %1433 = vset.pattern.permute.xlu0 %v1505_v41 }
 0x15f   : > { %1347 = vmatmul.msk.f32.gmra.mxu3 %vm902_vm2, %v885_v42  ;;  %1179 = vperm.xlu0 %1433, %v1176_v40  }
 0x162   : > { %v854_v43 = vpop.f32.mrf.mxu2 }
 0x163   : > { %v855_v44 = vadd.f32 %v1825_v21, %v854_v43 }
 0x165   : > { %v886_v45 = vmax.f32 %v855_v44, 0.0 }
 0x167   : > { %1348 = vmatmul.msk.f32.gmra.mxu3 %vm902_vm2, %v886_v45 }
 0x16a   : > { %v857_v46 = vpop.f32.mrf.mxu2 }
 0x16b   : > { %v858_v47 = vadd.f32 %v1825_v21, %v857_v46 }
 0x16d   : > { %v887_v48 = vmax.f32 %v858_v47, 0.0 }
 0x16f   : > { %1349 = vmatmul.msk.f32.gmra.mxu3 %vm902_vm2, %v887_v48 }
 0x172   : > { %v860_v49 = vpop.f32.mrf.mxu2 }
 0x173   : > { %v861_v50 = vadd.f32 %v1825_v21, %v860_v49 }
 0x175   : > { %v888_v51 = vmax.f32 %v861_v50, 0.0 }
 0x177   : > { %1350 = vmatmul.msk.f32.gmra.mxu3 %vm902_vm2, %v888_v51 }
 0x17a   : > { %v863_v52 = vpop.f32.mrf.mxu2 }
 0x17b   : > { %v864_v53 = vadd.f32 %v1825_v21, %v863_v52 }
 0x17d   : > { %v889_v54 = vmax.f32 %v864_v53, 0.0 }
 0x17f   : > { %1351 = vmatmul.msk.f32.gmra.mxu3 %vm902_vm2, %v889_v54 }
 0x182   : > { %v866_v55 = vpop.f32.mrf.mxu2 }
 0x183   : > { %v867_v56 = vadd.f32 %v1825_v21, %v866_v55  ;;  %v1033_v55 = vld [vmem:[%s1931_s10] sm:$0x1] }
 0x185   : > { %v890_v57 = vmax.f32 %v867_v56, 0.0 }
 0x187   : > { %1352 = vmatmul.msk.f32.gmra.mxu3 %vm902_vm2, %v890_v57 }
 0x18a   : > { %v869_v58 = vpop.f32.mrf.mxu2 }
 0x18b   : > { %v870_v59 = vadd.f32 %v1825_v21, %v869_v58 }
 0x18d   : > { %v891_v60 = vmax.f32 %v870_v59, 0.0 }
 0x18f   : > { %1353 = vmatmul.msk.f32.gmra.mxu3 %vm902_vm2, %v891_v60 }
 0x192   : > { %v872_v62 = vpop.f32.mrf.mxu2 }
 0x193   : > { %v873_v63 = vadd.f32 %v1825_v21, %v872_v62 }
 0x195   : > { %v892_v0 = vmax.f32 %v873_v63, 0.0 }
 0x197   : > { %1354 = vmatmul.msk.f32.gmra.mxu3 %vm902_vm2, %v892_v0 }
 0x19a   : > { %v875_v1 = vpop.f32.mrf.mxu2 }
 0x19b   : > { %v876_v2 = vadd.f32 %v1825_v21, %v875_v1  ;;  %v1436_v21 = vld [vmem:[%s1929_s8] ss:$0 sm:$0xff] }
 0x19d   : > { %v893_v3 = vmax.f32 %v876_v2, 0.0 }
 0x19f   : > { %1355 = vmatmul.msk.f32.gmra.mxu3 %vm902_vm2, %v893_v3 }
 0x1aa   : > { %v1859_v4 = vpop.f32.mrf.mxu3 }
 0x1ab   : > { %v969_v52 = vadd.f32 %v1436_v21, %v1859_v4 }
 0x1ad   : > { %v1016_v54 = vmax.f32 %v969_v52, 0.0 }
 0x1b2   : > { %v971_v5 = vpop.f32.mrf.mxu3 }
 0x1b3   : > { %v972_v50 = vadd.f32 %v1436_v21, %v971_v5 }
 0x1b5   : > { %v1017_v53 = vmax.f32 %v972_v50, 0.0 }
 0x1ba   : > { %v974_v6 = vpop.f32.mrf.mxu3 }
 0x1bb   : > { %v975_v48 = vadd.f32 %v1436_v21, %v974_v6 }
 0x1bd   : > { %v1018_v51 = vmax.f32 %v975_v48, 0.0 }
 0x1c2   : > { %v977_v7 = vpop.f32.mrf.mxu3 }
 0x1c3   : > { %v978_v46 = vadd.f32 %v1436_v21, %v977_v7 }
 0x1c5   : > { %v1019_v49 = vmax.f32 %v978_v46, 0.0 }
 0x1ca   : > { %v980_v9 = vpop.f32.mrf.mxu3 }
 0x1cb   : > { %v981_v44 = vadd.f32 %v1436_v21, %v980_v9 }
 0x1cd   : > { %v1020_v47 = vmax.f32 %v981_v44, 0.0 }
 0x1d1   : > { %v1180_v56 = vpop.permute.xlu0 %1179 }
 0x1d2   : > { %v983_v10 = vpop.f32.mrf.mxu3  ;;  %v1182_v58 = vperm.slane %v1180_v56, 0 }
 0x1d3   : > { %v984_v42 = vadd.f32 %v1436_v21, %v983_v10 }
 0x1d5   : > { %v1021_v45 = vmax.f32 %v984_v42, 0.0  ;;  %v1173_v57 = vpop.f32.mrf.mxu1 }
 0x1da   : > { %v986_v11 = vpop.f32.mrf.mxu3 }
 0x1db   : > { %v987_v37 = vadd.f32 %v1436_v21, %v986_v11 }
 0x1dd   : > { %v1022_v43 = vmax.f32 %v987_v37, 0.0 }
 0x1e2   : > { %v989_v14 = vpop.f32.mrf.mxu3 }
 0x1e3   : > { %v990_v35 = vadd.f32 %v1436_v21, %v989_v14 }
 0x1e5   : > { %v1023_v38 = vmax.f32 %v990_v35, 0.0 }
 0x1ea   : > { %v992_v15 = vpop.f32.mrf.mxu3 }
 0x1eb   : > { %v993_v33 = vadd.f32 %v1436_v21, %v992_v15 }
 0x1ed   : > { %v1024_v36 = vmax.f32 %v993_v33, 0.0 }
 0x1f2   : > { %v995_v17 = vpop.f32.mrf.mxu3 }
 0x1f3   : > { %v996_v31 = vadd.f32 %v1436_v21, %v995_v17 }
 0x1f5   : > { %v1025_v34 = vmax.f32 %v996_v31, 0.0 }
 0x1fa   : > { %v998_v18 = vpop.f32.mrf.mxu3 }
 0x1fb   : > { %v999_v29 = vadd.f32 %v1436_v21, %v998_v18 }
 0x1fd   : > { %v1026_v32 = vmax.f32 %v999_v29, 0.0 }
 0x202   : > { %v1001_v19 = vpop.f32.mrf.mxu3 }
 0x203   : > { %v1002_v28 = vadd.f32 %v1436_v21, %v1001_v19 }
 0x205   : > { %v1027_v30 = vmax.f32 %v1002_v28, 0.0 }
 0x20a   : > { %v1004_v16 = vpop.f32.mrf.mxu3 }
 0x20b   : > { %v1005_v61 = vadd.f32 %v1436_v21, %v1004_v16 }
 0x20d   : > { %v1028_v8 = vmax.f32 %v1005_v61, 0.0 }
 0x212   : > { %v1007_v20 = vpop.f32.mrf.mxu3 }
 0x213   : > { %v1008_v25 = vadd.f32 %v1436_v21, %v1007_v20 }
 0x215   : > { %v1029_v27 = vmax.f32 %v1008_v25, 0.0 }
 0x21a   : > { %v1010_v13 = vpop.f32.mrf.mxu3 }
 0x21b   : > { %v1011_v24 = vadd.f32 %v1436_v21, %v1010_v13 }
 0x21d   : > { %v1030_v26 = vmax.f32 %v1011_v24, 0.0 }
 0x222   : > { %v1013_v22 = vpop.f32.mrf.mxu3 }
 0x223   : > { %v1014_v23 = vadd.f32 %v1436_v21, %v1013_v22 }
 0x225   : > { %v1031_v12 = vmax.f32 %v1014_v23, 0.0 }
 0x227   : > { %1356 = vmatpush.xpose.msk.msrb.mxu0 %vm489_vm0, %v1031_v12 }
 0x22b   : > { %1357 = vmatpush.xpose.msk.msrb.mxu0 %vm489_vm0, %v1030_v26 }
 0x22f   : > { %1358 = vmatpush.xpose.msk.msrb.mxu0 %vm489_vm0, %v1029_v27 }
 0x233   : > { %1359 = vmatpush.xpose.msk.msrb.mxu0 %vm489_vm0, %v1028_v8 }
 0x237   : > { %1360 = vmatpush.xpose.msk.msrb.mxu0 %vm489_vm0, %v1027_v30 }
 0x23b   : > { %1361 = vmatpush.xpose.msk.msrb.mxu0 %vm489_vm0, %v1026_v32 }
 0x23f   : > { %1362 = vmatpush.xpose.msk.msrb.mxu0 %vm489_vm0, %v1025_v34 }
 0x243   : > { %1363 = vmatpush.xpose.msk.msrb.mxu0 %vm489_vm0, %v1024_v36 }
 0x247   : > { %1364 = vmatpush.xpose.msk.msrb.mxu0 %vm489_vm0, %v1023_v38 }
 0x24b   : > { %1365 = vmatpush.xpose.msk.msrb.mxu0 %vm489_vm0, %v1022_v43 }
 0x24f   : > { %1366 = vmatpush.xpose.msk.msrb.mxu0 %vm489_vm0, %v1021_v45 }
 0x253   : > { %1367 = vmatpush.xpose.msk.msrb.mxu0 %vm489_vm0, %v1020_v47 }
 0x257   : > { %1368 = vmatpush.xpose.msk.msrb.mxu0 %vm489_vm0, %v1019_v49 }
 0x25b   : > { %1369 = vmatpush.xpose.msk.msrb.mxu0 %vm489_vm0, %v1018_v51 }
 0x25f   : > { %1370 = vmatpush.xpose.msk.msrb.mxu0 %vm489_vm0, %v1017_v53 }
 0x263   : > { %1371 = vmatpush.xpose.msk.msrb.mxu0 %vm489_vm0, %v1016_v54 }
 0x266   : > { %1372 = vmatmul.msk.f32.vlgmr.msrb.gmra.mxu0 %vm489_vm0, %v1033_v55 }
 0x2e3   : > { %v1102_v59 = vpop.f32.mrf.mxu0 }
 0x2e4   : > { %v1174_v60 = vadd.f32 %v1173_v57, %v1102_v59 }
 0x2e6   : > { %v1183_v62 = vadd.f32 %v1182_v58, %v1174_v60 }
 0x2e8   : > { %v1390_v63 = vmul.f32 -1.442695, %v1183_v62 }
 0x2ea   : > { %1437 = vpow2.f32 %v1390_v63 }
 0x2f0   : > { %v1438_v0 = vpop.eup %1437 }
 0x2f1   : > { %v1187_v1 = vadd.f32 1.0, %v1438_v0 }
 0x2f3   : > { %1439 = vrcp.f32 %v1187_v1  ;;  %v1199_v5 = vand.u32 2147483648, %v1187_v1  ;;  %v1197_v7 = vand.u32 2147483647, %v1187_v1  ;;  %vm1193_vm4 = vweird.f32 %v1187_v1 }
 0x2f5   : > { %v1200_v10 = vor.u32 1.1754944e-38, %v1199_v5  ;;  %vm1198_vm6 = vcmp.eq.f32.partialorder %v1197_v7, 8.507059e+37 }
 0x2f9   : > { %v1440_v2 = vpop.eup %1439 }
 0x2fa   : > { %v1189_v3 = vmul.f32 %v1440_v2, %v1187_v1  ;;  %vm1194_vm3 = vweird.f32 %v1440_v2 }
 0x2fb   : > { %vm1195_vm5 = vmor %vm1193_vm4, %vm1194_vm3 }
 0x2fc   : > { %v1190_v4 = vsub.f32 1.0, %v1189_v3 }
 0x2fe   : > { %v1191_v6 = vmul.f32 %v1440_v2, %v1190_v4 }
 0x300   : > { %v1192_v9 = vadd.f32 %v1440_v2, %v1191_v6 }
 0x302   : > { %v1196_v11 = vsel %vm1195_vm5, %v1440_v2, %v1192_v9 }
 0x303   : > { %v1201_v14 = vsel %vm1198_vm6, %v1200_v10, %v1196_v11 }
 0x304   : > { %1203 = vst [vmem:[%s424_s22] sm:$0x1] %v1201_v14 }
 0x305   : > { %1468 = shalt.err (!%p1465_p3)
}
 0x306   : > { %1393 = dma.vmem_to_hbm [thread:$0]  (%p1612_p5), %s1216_s27, 16, %s1218_s29, %s1205_s30  }
 0x307 PF: > { %p1399_p4 = scmp.ge.s32.totalorder %s1503_s26, 2  ;;  %s1229_s18 = sand.u32 1, %s1491_s23  }
 0x308   : > { %s1230_s22 = scalar_lea.sflag [#allocation4], %s1229_s18 }
 0x309   : > { %p1396_p7 = pnand %p1399_p4, %p1616_p6 }
 0x30b   : > { %p1397_p8 = pneg %p1396_p7 }
 0x30d   : > { %1486 = dma.done.wait (%p1397_p8), %s1230_s22, 16  }
 0x30e   : > { %1488 = vsyncadd (%p1397_p8), %s1230_s22, 4294967280  ;;  %p24_p9 = scmp.ge.s32.totalorder %s1599_s28, 6   ;;  %s1938_s23 = smov %s1495_s24 }
 0x30f   : > { %s1939_s24 = smov %s1499_s25  ;;  %s1940_s25 = smov %s1610_s13 }
 0x310   : > { %s1941_s26 = smov %s1599_s28  ;;  %26 = sbr.rel (!%p24_p9) target bundleno = 6 (0x6), region = 106 }
 0x315   :  { %1235 = vsyncpa [#allocation4], 1 }
 0x316   :  { %1237 = vsyncpa [#allocation4 + $0x1], 1 }

</bundles_post_ra>
